<compile_context>
chip_gen: v7x
topology: tpu7x:2x2x1
jax: 0.10.0
libtpu: 0.0.40
codegen_flags: <defaults>
</compile_context>

<pallas_src>
import functools

import jax
import jax.numpy as jnp
from jax.experimental import pallas as pl
from jax.experimental.pallas import tpu as pltpu

IN_DIM = 32 * 32 * 3          # 3072
H1, H2 = 64, 32
NUM_CLASSES = 10
PAD_CLASSES = 128             # lane-dense output width
TILE_B_DEFAULT = 1024         # f32 x tiles: ~24 MB double-buffered, fits all gens


def _round_up(x, m):
    return ((x + m - 1) // m) * m


def fnn_kernel(x_ref, w1_ref, b1_ref, w2_ref, b2_ref, w3_ref, b3_ref, out_ref):
    # x arrives as f32 straight from HBM (no wrapper-side convert pass);
    # the bf16 cast runs on the VPU, hidden under the x DMA.
    x = x_ref[...].astype(jnp.bfloat16)                               # (TILE_B, 3072)

    # fc1 + tanh  (bf16 x bf16 -> f32 accumulate on the MXU)
    h1 = jnp.dot(x, w1_ref[...], preferred_element_type=jnp.float32) + b1_ref[...]
    h1 = jnp.tanh(h1).astype(jnp.bfloat16)                            # (TILE_B, 64)

    # fc2 + relu
    h2 = jnp.dot(h1, w2_ref[...], preferred_element_type=jnp.float32) + b2_ref[...]
    h2 = jnp.maximum(h2, 0.0).astype(jnp.bfloat16)                    # (TILE_B, 32)

    # fc3 (padded to 128 classes; padded f32 bias = -1e30 -> exp() == 0) + softmax.
    # Keep logits / b3p in f32 so the -1e30 pad stays finite and exact.
    logits = jnp.dot(h2, w3_ref[...], preferred_element_type=jnp.float32) + b3_ref[...]
    m = jnp.max(logits, axis=1, keepdims=True)
    e = jnp.exp(logits - m)
    inv = pl.reciprocal(jnp.sum(e, axis=1, keepdims=True), approx=True)
    out_ref[...] = (e * inv).astype(out_ref.dtype)                    # (TILE_B, 128) bf16


@functools.partial(jax.jit, static_argnames=("tile_b",))
def fnn_forward(x_nchw, params, tile_b=TILE_B_DEFAULT):
    """x_nchw: (B, 3, 32, 32) float32 -> (B, 10) softmax probabilities (f32)."""
    B = x_nchw.shape[0]
    w1, b1, w2, b2, w3, b3 = params

    # Flatten like torch x.view(B, -1); stays f32 (reshape is free, no extra HBM pass).
    x_flat = x_nchw.reshape(B, -1)

    # Weights for the MXU: bf16 (accumulation stays f32 in-kernel).
    w1_bf = w1.astype(jnp.bfloat16)
    w2_bf = w2.astype(jnp.bfloat16)
    w3p = (jnp.zeros((H2, PAD_CLASSES), jnp.bfloat16)
           .at[:, :NUM_CLASSES].set(w3.astype(jnp.bfloat16)))
    # Padded bias columns -> -1e30 (f32) so exp() == 0 for the fake classes.
    b3p = jnp.full((1, PAD_CLASSES), -1e30, jnp.float32).at[:, :NUM_CLASSES].set(b3)

    # Tile heuristic: >= 4 grid steps whenever B allows it (v7x megacore +
    # DMA/compute overlap), tile_b a multiple of 8, capped at TILE_B.
    tile_b = max(8, min(tile_b, _round_up(pl.cdiv(B, 4), 8)))
    grid = (pl.cdiv(B, tile_b),)          # last block partial: clipped reads, masked stores
    n_rows = grid[0] * tile_b

    # Scoped-VMEM budget from the actual footprint (+ headroom), never the
    # physical cap.
    weight_vmem = (
        IN_DIM * H1 * 2                   # w1 bf16
        + 8 * 128 * 4                     # b1 (tile-padded)
        + H1 * 128 * 2                    # w2 bf16 (lane-padded)
        + 8 * 128 * 4                     # b2
        + H2 * PAD_CLASSES * 2            # w3 bf16
        + 8 * PAD_CLASSES * 4             # b3 f32
    )
    vmem_bytes = (
        2 * tile_b * IN_DIM * 4           # x f32 tile, double-buffered
        + 2 * tile_b * PAD_CLASSES * 2    # out bf16 tile, double-buffered
        + 2 * weight_vmem                 # resident weights (conservatively x2)
        + tile_b * IN_DIM * 2             # in-kernel bf16 copy of the x tile
        + tile_b * 2048                   # h1/h2/logits/exp temporaries
        + (8 << 20)                       # compiler internal scratch headroom
    )
    vmem_bytes = int(min(vmem_bytes, 56 << 20))

    cost = pl.CostEstimate(
        flops=2 * n_rows * (IN_DIM * H1 + H1 * H2 + H2 * PAD_CLASSES),
        transcendentals=n_rows * (H1 + PAD_CLASSES),
        bytes_accessed=(
            B * IN_DIM * 4                          # x read (f32, clipped to real rows)
            + w1_bf.size * 2 + b1.size * 4
            + w2_bf.size * 2 + b2.size * 4
            + w3p.size * 2 + b3p.size * 4
            + B * PAD_CLASSES * 2                   # bf16 output write
        ),
    )

    out_padded = pl.pallas_call(
        fnn_kernel,
        out_shape=jax.ShapeDtypeStruct((B, PAD_CLASSES), jnp.bfloat16),
        grid_spec=pltpu.PrefetchScalarGridSpec(
            num_scalar_prefetch=0,
            grid=grid,
            in_specs=[
                # x: streamed per batch tile (auto double-buffered), f32 from HBM
                pl.BlockSpec((tile_b, IN_DIM), lambda i: (i, 0)),
                # weights/biases: full blocks, resident across all tiles
                pl.BlockSpec((IN_DIM, H1), lambda i: (0, 0)),
                pl.BlockSpec((1, H1), lambda i: (0, 0)),
                pl.BlockSpec((H1, H2), lambda i: (0, 0)),
                pl.BlockSpec((1, H2), lambda i: (0, 0)),
                pl.BlockSpec((H2, PAD_CLASSES), lambda i: (0, 0)),
                pl.BlockSpec((1, PAD_CLASSES), lambda i: (0, 0)),
            ],
            out_specs=pl.BlockSpec((tile_b, PAD_CLASSES), lambda i: (i, 0)),
        ),
        compiler_params=pltpu.CompilerParams(
            dimension_semantics=("parallel",),   # shards batch tiles across v7x's 2 TCs
            vmem_limit_bytes=vmem_bytes,
        ),
        cost_estimate=cost,
    )(x_flat, w1_bf, b1, w2, b2, w3p, b3p)

    # Slice real classes, upcast to f32 for downstream use.
    return out_padded[:, :NUM_CLASSES].astype(jnp.float32)


def init_params(key):
    """Deterministic init matching nn.Linear default (uniform +/- 1/sqrt(fan_in)).

    Weights stored pre-transposed as (in, out) so the kernel does x @ W + b.
    Biases stored as (1, out) so they stay 2D (sublane x lane) on TPU.
    """
    ks = jax.random.split(key, 6)

    def linear(kw, kb, fan_in, fan_out):
        bound = 1.0 / jnp.sqrt(fan_in)
        w = jax.random.uniform(kw, (fan_in, fan_out), jnp.float32, -bound, bound)
        b = jax.random.uniform(kb, (1, fan_out), jnp.float32, -bound, bound)
        return w, b

    w1, b1 = linear(ks[0], ks[1], IN_DIM, H1)
    w2, b2 = linear(ks[2], ks[3], H1, H2)
    w3, b3 = linear(ks[4], ks[5], H2, NUM_CLASSES)
    return (w1, b1, w2, b2, w3, b3)


def fnn_reference(x_nchw, params):
    """Pure-JAX f32 reference for validation."""
    w1, b1, w2, b2, w3, b3 = params
    x = x_nchw.reshape(x_nchw.shape[0], -1)
    h1 = jnp.tanh(x @ w1 + b1)
    h2 = jax.nn.relu(h1 @ w2 + b2)
    return jax.nn.softmax(h2 @ w3 + b3, axis=1)


if __name__ == "__main__":
    key = jax.random.PRNGKey(0)
    k_x, k_p = jax.random.split(key)

    B = 2
    x = jax.random.normal(k_x, (B, 3, 32, 32), jnp.float32)   # NCHW like PyTorch
    params = init_params(k_p)

    out = fnn_forward(x, params)
    out = jax.block_until_ready(out)

    ref = fnn_reference(x, params)
    assert out.shape == (B, NUM_CLASSES)
    # bf16 matmul operands + bf16 output + approx reciprocal -> relaxed tolerance.
    assert jnp.allclose(out, ref, atol=3e-2, rtol=3e-2), "mismatch vs reference"
    assert jnp.allclose(jnp.sum(out, axis=1), 1.0, atol=1e-2), "softmax rows must sum to ~1"

    print("KERNEL_OK")
</pallas_src>

<mosaic_0001>
module attributes {stable_mosaic.version = 11 : i64} {
  func.func @fnn_kernel(%arg0: i32, %arg1: memref<8x3072xf32, #tpu.memory_space<vmem>>, %arg2: memref<3072x64xbf16, #tpu.memory_space<vmem>>, %arg3: memref<1x64xf32, #tpu.memory_space<vmem>>, %arg4: memref<64x32xf32, #tpu.memory_space<vmem>>, %arg5: memref<1x32xf32, #tpu.memory_space<vmem>>, %arg6: memref<32x128xbf16, #tpu.memory_space<vmem>>, %arg7: memref<1x128xf32, #tpu.memory_space<vmem>>, %arg8: memref<8x128xbf16, #tpu.memory_space<vmem>>) attributes {dimension_semantics = [#tpu.dimension_semantics<parallel>], iteration_bounds = array<i64: 1>, scalar_prefetch = 0 : i64, scratch_operands = 0 : i64, tpu.core_type = #tpu.core_type<tc>, window_params = [{transform_indices = @transform_0, window_bounds = array<i64: 8, 3072>}, {pipeline_mode = #tpu.pipeline_mode<synchronous>, transform_indices = @transform_1, window_bounds = array<i64: 3072, 64>}, {pipeline_mode = #tpu.pipeline_mode<synchronous>, transform_indices = @transform_2, window_bounds = array<i64: 1, 64>}, {pipeline_mode = #tpu.pipeline_mode<synchronous>, transform_indices = @transform_3, window_bounds = array<i64: 64, 32>}, {pipeline_mode = #tpu.pipeline_mode<synchronous>, transform_indices = @transform_4, window_bounds = array<i64: 1, 32>}, {pipeline_mode = #tpu.pipeline_mode<synchronous>, transform_indices = @transform_5, window_bounds = array<i64: 32, 128>}, {pipeline_mode = #tpu.pipeline_mode<synchronous>, transform_indices = @transform_6, window_bounds = array<i64: 1, 128>}, {transform_indices = @transform_7, window_bounds = array<i64: 8, 128>}]} {
    %c0 = arith.constant 0 : index
    %c0_0 = arith.constant 0 : index
    %0 = vector.load %arg1[%c0, %c0_0] : memref<8x3072xf32, #tpu.memory_space<vmem>>, vector<8x3072xf32>
    %1 = arith.truncf %0 : vector<8x3072xf32> to vector<8x3072xbf16>
    %c0_1 = arith.constant 0 : index
    %c0_2 = arith.constant 0 : index
    %2 = vector.load %arg2[%c0_1, %c0_2] : memref<3072x64xbf16, #tpu.memory_space<vmem>>, vector<3072x64xbf16>
    %cst = arith.constant dense<0.000000e+00> : vector<8x64xf32>
    %3 = tpu.matmul %1, %2, %cst {dimension_numbers = #tpu.dot_dimension_numbers<[1], [0], [0], [1], [0, 0, 1, 1], [], []>} : vector<8x3072xbf16>, vector<3072x64xbf16>, vector<8x64xf32> -> vector<8x64xf32>
    %c0_3 = arith.constant 0 : index
    %c0_4 = arith.constant 0 : index
    %4 = vector.load %arg3[%c0_3, %c0_4] : memref<1x64xf32, #tpu.memory_space<vmem>>, vector<1x64xf32>
    %5 = vector.broadcast %4 : vector<1x64xf32> to vector<8x64xf32>
    %6 = arith.addf %3, %5 : vector<8x64xf32>
    %7 = math.tanh %6 : vector<8x64xf32>
    %8 = arith.truncf %7 : vector<8x64xf32> to vector<8x64xbf16>
    %c0_5 = arith.constant 0 : index
    %c0_6 = arith.constant 0 : index
    %9 = vector.load %arg4[%c0_5, %c0_6] : memref<64x32xf32, #tpu.memory_space<vmem>>, vector<64x32xf32>
    %cst_7 = arith.constant dense<0.000000e+00> : vector<8x32xf32>
    %10 = tpu.matmul %8, %9, %cst_7 {dimension_numbers = #tpu.dot_dimension_numbers<[1], [0], [0], [1], [0, 0, 1, 1], [], []>} : vector<8x64xbf16>, vector<64x32xf32>, vector<8x32xf32> -> vector<8x32xf32>
    %c0_8 = arith.constant 0 : index
    %c0_9 = arith.constant 0 : index
    %11 = vector.load %arg5[%c0_8, %c0_9] : memref<1x32xf32, #tpu.memory_space<vmem>>, vector<1x32xf32>
    %12 = vector.broadcast %11 : vector<1x32xf32> to vector<8x32xf32>
    %13 = arith.addf %10, %12 : vector<8x32xf32>
    %cst_10 = arith.constant 0.000000e+00 : f32
    %14 = vector.broadcast %cst_10 : f32 to vector<8x32xf32>
    %15 = arith.maximumf %13, %14 : vector<8x32xf32>
    %16 = arith.truncf %15 : vector<8x32xf32> to vector<8x32xbf16>
    %c0_11 = arith.constant 0 : index
    %c0_12 = arith.constant 0 : index
    %17 = vector.load %arg6[%c0_11, %c0_12] : memref<32x128xbf16, #tpu.memory_space<vmem>>, vector<32x128xbf16>
    %cst_13 = arith.constant dense<0.000000e+00> : vector<8x128xf32>
    %18 = tpu.matmul %16, %17, %cst_13 {dimension_numbers = #tpu.dot_dimension_numbers<[1], [0], [0], [1], [0, 0, 1, 1], [], []>} : vector<8x32xbf16>, vector<32x128xbf16>, vector<8x128xf32> -> vector<8x128xf32>
    %c0_14 = arith.constant 0 : index
    %c0_15 = arith.constant 0 : index
    %19 = vector.load %arg7[%c0_14, %c0_15] : memref<1x128xf32, #tpu.memory_space<vmem>>, vector<1x128xf32>
    %20 = vector.broadcast %19 : vector<1x128xf32> to vector<8x128xf32>
    %21 = arith.addf %18, %20 : vector<8x128xf32>
    %cst_16 = arith.constant dense<0xFF800000> : vector<8xf32>
    %22 = vector.multi_reduction <maximumf>, %21, %cst_16 [1] : vector<8x128xf32> to vector<8xf32>
    %23 = vector.shape_cast %22 : vector<8xf32> to vector<8x1xf32>
    %24 = vector.broadcast %23 : vector<8x1xf32> to vector<8x128xf32>
    %25 = arith.subf %21, %24 : vector<8x128xf32>
    %26 = math.exp %25 : vector<8x128xf32>
    %cst_17 = arith.constant dense<0.000000e+00> : vector<8xf32>
    %27 = vector.multi_reduction <add>, %26, %cst_17 [1] : vector<8x128xf32> to vector<8xf32>
    %28 = vector.shape_cast %27 : vector<8xf32> to vector<8x1xf32>
    %29 = tpu.reciprocal %28 {approx = true} : vector<8x1xf32> -> vector<8x1xf32>
    %30 = vector.broadcast %29 : vector<8x1xf32> to vector<8x128xf32>
    %31 = arith.mulf %26, %30 : vector<8x128xf32>
    %32 = arith.truncf %31 : vector<8x128xf32> to vector<8x128xbf16>
    %c0_18 = arith.constant 0 : index
    %c0_19 = arith.constant 0 : index
    %33 = vector.load %arg8[%c0_18, %c0_19] : memref<8x128xbf16, #tpu.memory_space<vmem>>, vector<8x128xbf16>
    tpu.vector_store %arg8[%c0_18, %c0_19], %32 {strides = array<i32>} : memref<8x128xbf16, #tpu.memory_space<vmem>>, vector<8x128xbf16>,
    return
  }
  func.func @transform_0(%arg0: i32) -> (i32, i32) {
    %c0_i32 = arith.constant 0 : i32
    %c0_i32_0 = arith.constant 0 : i32
    return %arg0, %c0_i32 : i32, i32
  }
  func.func @transform_1(%arg0: i32) -> (i32, i32) {
    %c0_i32 = arith.constant 0 : i32
    %c0_i32_0 = arith.constant 0 : i32
    %c0_i32_1 = arith.constant 0 : i32
    return %c0_i32, %c0_i32_0 : i32, i32
  }
  func.func @transform_2(%arg0: i32) -> (i32, i32) {
    %c0_i32 = arith.constant 0 : i32
    %c0_i32_0 = arith.constant 0 : i32
    %c0_i32_1 = arith.constant 0 : i32
    return %c0_i32, %c0_i32_0 : i32, i32
  }
  func.func @transform_3(%arg0: i32) -> (i32, i32) {
    %c0_i32 = arith.constant 0 : i32
    %c0_i32_0 = arith.constant 0 : i32
    %c0_i32_1 = arith.constant 0 : i32
    return %c0_i32, %c0_i32_0 : i32, i32
  }
  func.func @transform_4(%arg0: i32) -> (i32, i32) {
    %c0_i32 = arith.constant 0 : i32
    %c0_i32_0 = arith.constant 0 : i32
    %c0_i32_1 = arith.constant 0 : i32
    return %c0_i32, %c0_i32_0 : i32, i32
  }
  func.func @transform_5(%arg0: i32) -> (i32, i32) {
    %c0_i32 = arith.constant 0 : i32
    %c0_i32_0 = arith.constant 0 : i32
    %c0_i32_1 = arith.constant 0 : i32
    return %c0_i32, %c0_i32_0 : i32, i32
  }
  func.func @transform_6(%arg0: i32) -> (i32, i32) {
    %c0_i32 = arith.constant 0 : i32
    %c0_i32_0 = arith.constant 0 : i32
    %c0_i32_1 = arith.constant 0 : i32
    return %c0_i32, %c0_i32_0 : i32, i32
  }
  func.func @transform_7(%arg0: i32) -> (i32, i32) {
    %c0_i32 = arith.constant 0 : i32
    %c0_i32_0 = arith.constant 0 : i32
    return %arg0, %c0_i32 : i32, i32
  }
}

</mosaic_0001>

<bundles_post_ra>
// kernel: fnn_forward.1
= control target key start
LH: loop header
LB: loop body
LE: loop exit
PB: predicated region body
PF: predicated region fallthrough
CT: control target
= control target key end

     0   :  { %v82_v30 = vlaneseq  ;;  %v3364_v35 = vmov 1983009808   ;;  %vm3366_vm0 = vmmov 0   ;;  %vm2379_vm1 = vcmask 523264   ;;  %s4129_s0 = inlined_call_operand.vmem [shape: f32[2,3072], index: 0, kind: input, shape index: {}]   ;;  %s4130_s1 = inlined_call_operand.vmem [shape: bf16[3072,64], index: 1, kind: input, shape index: {}]   ;;  %s4131_s2 = inlined_call_operand.vmem [shape: f32[1,64], index: 2, kind: input, shape index: {}]   ;;  %s4132_s3 = inlined_call_operand.vmem [shape: f32[64,32], index: 3, kind: input, shape index: {}]   ;;  %s4133_s4 = inlined_call_operand.vmem [shape: f32[1,32], index: 4, kind: input, shape index: {}]   ;;  %s4134_s5 = inlined_call_operand.vmem [shape: bf16[32,128], index: 5, kind: input, shape index: {}]   ;;  %s4135_s6 = inlined_call_operand.vmem [shape: f32[1,128], index: 6, kind: input, shape index: {}]   ;;  %s4136_s7 = inlined_call_operand.vmem [shape: bf16[2,128], index: 7, kind: output, shape index: {}]  }
   0x1   :  { %v3128_v0 = vld [vmem:[%s4130_s1 + $0x40] sm:$0xff]   ;;  %v3132_v4 = vld [vmem:[%s4130_s1 + $0x48] sm:$0xff]   ;;  %v3136_v8 = vld [vmem:[%s4130_s1 + $0x50] sm:$0xff]   ;;  %v80_v36 = vunpack.c.l.s4 %v3364_v35  ;;  %vm2480_vm2 = vcmask 261120  }
   0x2   :  { %v3129_v1 = vld [vmem:[%s4130_s1 + $0xc0] sm:$0xff]   ;;  %2807 = vmatprep.subr.bf16.mxu0 %v3128_v0  ;;  %v3133_v5 = vld [vmem:[%s4130_s1 + $0xc8] sm:$0xff]   ;;  %v3137_v9 = vld [vmem:[%s4130_s1 + $0xd0] sm:$0xff]   ;;  %v3511_v37 = vshrl.u32 %v82_v30, 7 }
   0x3   :  { %v3130_v2 = vld [vmem:[%s4130_s1] sm:$0xff]   ;;  %2829 = vmatprep.subr.bf16.mxu1 %v3129_v1  ;;  %v3134_v6 = vld [vmem:[%s4130_s1 + $0x8] sm:$0xff]   ;;  %v3138_v10 = vld [vmem:[%s4130_s1 + $0x10] sm:$0xff]   ;;  %v81_v40 = vunpack.c.0.s8 %v80_v36 }
   0x4   :  { %v3131_v3 = vld [vmem:[%s4130_s1 + $0x80] sm:$0xff]   ;;  %2808 = vmatpush3.bf16.msra.mxu0 %v3130_v2  ;;  %v3135_v7 = vld [vmem:[%s4130_s1 + $0x88] sm:$0xff]   ;;  %v3139_v11 = vld [vmem:[%s4130_s1 + $0x90] sm:$0xff]  }
   0x5   :  { %2830 = vmatpush3.bf16.msra.mxu1 %v3131_v3  ;;  %2809 = vmatprep.subr.bf16.mxu0 %v3132_v4  ;;  %v3140_v12 = vld [vmem:[%s4130_s1 + $0x58] sm:$0xff]   ;;  %v3144_v16 = vld [vmem:[%s4130_s1 + $0x60] sm:$0xff]   ;;  %v3148_v20 = vld [vmem:[%s4130_s1 + $0x68] sm:$0xff]   ;;  %v3526_v43 = vsub.s32 %v81_v40, %v3511_v37 }
   0x6   :  { %2831 = vmatprep.subr.bf16.mxu1 %v3133_v5  ;;  %v3141_v13 = vld [vmem:[%s4130_s1 + $0xd8] sm:$0xff]   ;;  %v3145_v17 = vld [vmem:[%s4130_s1 + $0xe0] sm:$0xff]   ;;  %v3149_v21 = vld [vmem:[%s4130_s1 + $0xe8] sm:$0xff]  }
   0x7   :  { %v3142_v14 = vld [vmem:[%s4130_s1 + $0x18] sm:$0xff]   ;;  %v3146_v18 = vld [vmem:[%s4130_s1 + $0x20] sm:$0xff]   ;;  %v3150_v22 = vld [vmem:[%s4130_s1 + $0x28] sm:$0xff]  }
   0x8   :  { %2810 = vmatpush3.bf16.msra.mxu0 %v3134_v6  ;;  %v3143_v15 = vld [vmem:[%s4130_s1 + $0x98] sm:$0xff]   ;;  %v3147_v19 = vld [vmem:[%s4130_s1 + $0xa0] sm:$0xff]   ;;  %v3151_v23 = vld [vmem:[%s4130_s1 + $0xa8] sm:$0xff]  }
   0x9   :  { %2832 = vmatpush3.bf16.msra.mxu1 %v3135_v7  ;;  %2811 = vmatprep.subr.bf16.mxu0 %v3136_v8  ;;  %v3152_v24 = vld [vmem:[%s4130_s1 + $0x70] sm:$0xff]   ;;  %v3156_v28 = vld [vmem:[%s4130_s1 + $0x78] sm:$0xff]   ;;  %v3166_v41 = vld [vmem:[%s4130_s1 + $0x140] sm:$0xff]  }
   0xa   :  { %2833 = vmatprep.subr.bf16.mxu1 %v3137_v9  ;;  %v3153_v25 = vld [vmem:[%s4130_s1 + $0xf0] sm:$0xff]   ;;  %v3157_v29 = vld [vmem:[%s4130_s1 + $0xf8] sm:$0xff]   ;;  %v3167_v42 = vld [vmem:[%s4130_s1 + $0x1c0] sm:$0xff]  }
   0xb   :  { %v3154_v26 = vld [vmem:[%s4130_s1 + $0x30] sm:$0xff]   ;;  %v3158_v31 = vld [vmem:[%s4130_s1 + $0x38] sm:$0xff]   ;;  %v3168_v52 = vld [vmem:[%s4130_s1 + $0x100] sm:$0xff]  }
   0xc   :  { %2812 = vmatpush3.bf16.msra.mxu0 %v3138_v10  ;;  %v3155_v27 = vld [vmem:[%s4130_s1 + $0xb0] sm:$0xff]   ;;  %v3159_v32 = vld [vmem:[%s4130_s1 + $0xb8] sm:$0xff]   ;;  %v3169_v53 = vld [vmem:[%s4130_s1 + $0x180] sm:$0xff]  }
   0xd   :  { %2834 = vmatpush3.bf16.msra.mxu1 %v3139_v11  ;;  %2813 = vmatprep.subr.bf16.mxu0 %v3140_v12  ;;  %v3160_v33 = vld [vmem:[%s4129_s0] ss:$48 sps:$4 sm:$0xff]   ;;  %v3164_v38 = vld [vmem:[%s4129_s0 + $0x4] ss:$48 sps:$4 sm:$0xff]   ;;  %v3170_v58 = vld [vmem:[%s4130_s1 + $0x148] sm:$0xff]  }
   0xe   :  { %2835 = vmatprep.subr.bf16.mxu1 %v3141_v13  ;;  %v3162_v34 = vld [vmem:[%s4129_s0 + $0x60] ss:$48 sps:$4 sm:$0xff]   ;;  %v3165_v39 = vld [vmem:[%s4129_s0 + $0x64] ss:$48 sps:$4 sm:$0xff]   ;;  %v85_v44 = vrot.slane %v3160_v33, %v3526_v43  ;;  %v92_v46 = vrot.slane %v3164_v38, %v3526_v43  ;;  %v3171_v59 = vld [vmem:[%s4130_s1 + $0x1c8] sm:$0xff]  }
   0xf   :  { %v99_v45 = vrot.slane %v3162_v34, %v3526_v43  ;;  %v106_v47 = vrot.slane %v3165_v39, %v3526_v43  ;;  %v3172_v60 = vld [vmem:[%s4130_s1 + $0x108] sm:$0xff]   ;;  %v3174_v62 = vld [vmem:[%s4130_s1 + $0x150] sm:$0xff]   ;;  %v3178_v2 = vld [vmem:[%s4130_s1 + $0x158] sm:$0xff]  }
  0x10   :  { %2814 = vmatpush3.bf16.msra.mxu0 %v3142_v14  ;;  %v3173_v61 = vld [vmem:[%s4130_s1 + $0x188] sm:$0xff]   ;;  %v3175_v63 = vld [vmem:[%s4130_s1 + $0x1d0] sm:$0xff]   ;;  %v3179_v3 = vld [vmem:[%s4130_s1 + $0x1d8] sm:$0xff]  }
  0x11   :  { %2836 = vmatpush3.bf16.msra.mxu1 %v3143_v15  ;;  %2815 = vmatprep.subr.bf16.mxu0 %v3144_v16  ;;  %v108_v48 = vcombine.high %v85_v44, %v99_v45  ;;  %v110_v49 = vcombine.high %v92_v46, %v106_v47  ;;  %v107_v50 = vcombine.low %v85_v44, %v99_v45  ;;  %v3176_v0 = vld [vmem:[%s4130_s1 + $0x110] sm:$0xff]   ;;  %v3180_v4 = vld [vmem:[%s4130_s1 + $0x118] sm:$0xff]   ;;  %v3182_v6 = vld [vmem:[%s4130_s1 + $0x160] sm:$0xff]  }
  0x12   :  { %2837 = vmatprep.subr.bf16.mxu1 %v3145_v17  ;;  %v109_v51 = vcombine.low %v92_v46, %v106_v47  ;;  %v3177_v1 = vld [vmem:[%s4130_s1 + $0x190] sm:$0xff]   ;;  %v3181_v5 = vld [vmem:[%s4130_s1 + $0x198] sm:$0xff]   ;;  %v3183_v7 = vld [vmem:[%s4130_s1 + $0x1e0] sm:$0xff]  }
  0x13   :  { %v316_v54 = vpack.c.bf16 %v108_v48, %v108_v48  ;;  %v318_v55 = vpack.c.bf16 %v110_v49, %v110_v49  ;;  %v315_v56 = vpack.c.bf16 %v107_v50, %v107_v50  ;;  %v3184_v8 = vld [vmem:[%s4130_s1 + $0x120] sm:$0xff]   ;;  %v3186_v10 = vld [vmem:[%s4130_s1 + $0x168] sm:$0xff]   ;;  %v3190_v14 = vld [vmem:[%s4130_s1 + $0x170] sm:$0xff]  }
  0x14   :  { %2816 = vmatpush3.bf16.msra.mxu0 %v3146_v18  ;;  %v317_v57 = vpack.c.bf16 %v109_v51, %v109_v51  ;;  %v3185_v9 = vld [vmem:[%s4130_s1 + $0x1a0] sm:$0xff]   ;;  %v3187_v11 = vld [vmem:[%s4130_s1 + $0x1e8] sm:$0xff]   ;;  %v3191_v15 = vld [vmem:[%s4130_s1 + $0x1f0] sm:$0xff]  }
  0x15   :  { %2838 = vmatpush3.bf16.msra.mxu1 %v3147_v19  ;;  %2817 = vmatprep.subr.bf16.mxu0 %v3148_v20  ;;  %v3188_v12 = vld [vmem:[%s4130_s1 + $0x128] sm:$0xff]   ;;  %v3192_v16 = vld [vmem:[%s4130_s1 + $0x130] sm:$0xff]   ;;  %v3194_v18 = vld [vmem:[%s4130_s1 + $0x178] sm:$0xff]  }
  0x16   :  { %2839 = vmatprep.subr.bf16.mxu1 %v3149_v21  ;;  %1914 = vmatprep.mubr.bf16.mxu0 %v316_v54  ;;  %v3189_v13 = vld [vmem:[%s4130_s1 + $0x1a8] sm:$0xff]   ;;  %v3193_v17 = vld [vmem:[%s4130_s1 + $0x1b0] sm:$0xff]   ;;  %v3195_v19 = vld [vmem:[%s4130_s1 + $0x1f8] sm:$0xff]  }
  0x17   :  { %1954 = vmatprep.mubr.bf16.mxu1 %v318_v55  ;;  %v3198_v20 = vld [vmem:[%s4129_s0 + $0x8] ss:$48 sps:$4 sm:$0xff]   ;;  %v3204_v30 = vld [vmem:[%s4130_s1 + $0x240] sm:$0xff]   ;;  %v3212_v48 = vld [vmem:[%s4130_s1 + $0x250] sm:$0xff]  }
  0x18   :  { %2818 = vmatpush3.bf16.msra.mxu0 %v3150_v22  ;;  %v3200_v21 = vld [vmem:[%s4129_s0 + $0x68] ss:$48 sps:$4 sm:$0xff]   ;;  %v3202_v22 = vld [vmem:[%s4129_s0 + $0xc] ss:$48 sps:$4 sm:$0xff]   ;;  %v3205_v33 = vld [vmem:[%s4130_s1 + $0x2c0] sm:$0xff]  }
  0x19   :  { %2840 = vmatpush3.bf16.msra.mxu1 %v3151_v23  ;;  %2819 = vmatprep.subr.bf16.mxu0 %v3152_v24  ;;  %v3196_v23 = vld [vmem:[%s4130_s1 + $0x138] sm:$0xff]   ;;  %v3206_v36 = vld [vmem:[%s4130_s1 + $0x200] sm:$0xff]   ;;  %v3208_v44 = vld [vmem:[%s4130_s1 + $0x248] sm:$0xff]  }
  0x1a   :  { %2841 = vmatprep.subr.bf16.mxu1 %v3153_v25  ;;  %v3203_v24 = vld [vmem:[%s4129_s0 + $0x6c] ss:$48 sps:$4 sm:$0xff]   ;;  %v3207_v40 = vld [vmem:[%s4130_s1 + $0x280] sm:$0xff]   ;;  %v3213_v49 = vld [vmem:[%s4130_s1 + $0x2d0] sm:$0xff]  }
  0x1b   :  { %v3197_v25 = vld [vmem:[%s4130_s1 + $0x1b8] sm:$0xff]   ;;  %v3209_v45 = vld [vmem:[%s4130_s1 + $0x2c8] sm:$0xff]   ;;  %v3214_v50 = vld [vmem:[%s4130_s1 + $0x210] sm:$0xff]  }
  0x1c   :  { %2820 = vmatpush3.bf16.msra.mxu0 %v3154_v26  ;;  %v121_v26 = vrot.slane %v3198_v20, %v3526_v43  ;;  %v3210_v46 = vld [vmem:[%s4130_s1 + $0x208] sm:$0xff]   ;;  %v3215_v51 = vld [vmem:[%s4130_s1 + $0x290] sm:$0xff]   ;;  %v3218_v54 = vld [vmem:[%s4130_s1 + $0x218] sm:$0xff]  }
  0x1d   :  { %2842 = vmatpush3.bf16.msra.mxu1 %v3155_v27  ;;  %2821 = vmatprep.subr.bf16.mxu0 %v3156_v28  ;;  %v135_v27 = vrot.slane %v3200_v21, %v3526_v43  ;;  %v128_v28 = vrot.slane %v3202_v22, %v3526_v43  ;;  %v3211_v47 = vld [vmem:[%s4130_s1 + $0x288] sm:$0xff]   ;;  %v3219_v55 = vld [vmem:[%s4130_s1 + $0x298] sm:$0xff]   ;;  %v3244_v21 = vld [vmem:[%s4130_s1 + $0x300] sm:$0xff]  }
  0x1e   :  { %2843 = vmatprep.subr.bf16.mxu1 %v3157_v29  ;;  %v142_v29 = vrot.slane %v3203_v24, %v3526_v43 }
  0x20   :  { %2822 = vmatpush3.bf16.msra.mxu0 %v3158_v31  ;;  %v144_v31 = vcombine.high %v121_v26, %v135_v27  ;;  %v146_v34 = vcombine.high %v128_v28, %v142_v29  ;;  %v145_v35 = vcombine.low %v128_v28, %v142_v29  ;;  %v3247_v29 = vld [vmem:[%s4130_s1 + $0x3c8] sm:$0xff]  }
  0x21   :  { %2844 = vmatpush3.bf16.msra.mxu1 %v3159_v32  ;;  %2851 = vmatprep.subr.bf16.mxu0 %v3166_v41  ;;  %v143_v32 = vcombine.low %v121_v26, %v135_v27  ;;  %v3246_v27 = vld [vmem:[%s4130_s1 + $0x348] sm:$0xff]  }
  0x22   :  { %2873 = vmatprep.subr.bf16.mxu1 %v3167_v42  ;;  %v320_v38 = vpack.c.bf16 %v144_v31, %v144_v31  ;;  %v322_v41 = vpack.c.bf16 %v146_v34, %v146_v34  ;;  %v321_v42 = vpack.c.bf16 %v145_v35, %v145_v35  ;;  %v3249_v31 = vld [vmem:[%s4130_s1 + $0x388] sm:$0xff]   ;;  %v3252_v34 = vld [vmem:[%s4130_s1 + $0x310] sm:$0xff]  }
  0x23   :  { %1915 = vmatmul.mubr.bf16.vlgmr.msra.gmra.mrb[0].mxu0 %v315_v56  ;;  %v319_v39 = vpack.c.bf16 %v143_v32, %v143_v32  ;;  %v3220_v56 = vld [vmem:[%s4130_s1 + $0x260] sm:$0xff]   ;;  %v3250_v32 = vld [vmem:[%s4130_s1 + $0x350] sm:$0xff]  }
  0x24   :  { %1955 = vmatmul.mubr.bf16.vlgmr.msra.gmra.mrb[0].mxu1 %v317_v57  ;;  %2852 = vmatpush3.bf16.msra.mxu0 %v3168_v52  ;;  %v3216_v52 = vld [vmem:[%s4130_s1 + $0x258] sm:$0xff]   ;;  %v3221_v57 = vld [vmem:[%s4130_s1 + $0x2e0] sm:$0xff]   ;;  %v3253_v35 = vld [vmem:[%s4130_s1 + $0x390] sm:$0xff]  }
  0x25   :  { %2874 = vmatpush3.bf16.msra.mxu1 %v3169_v53  ;;  %2853 = vmatprep.subr.bf16.mxu0 %v3170_v58  ;;  %v3217_v53 = vld [vmem:[%s4130_s1 + $0x2d8] sm:$0xff]   ;;  %v3222_v58 = vld [vmem:[%s4130_s1 + $0x220] sm:$0xff]  }
  0x26   :  { %2875 = vmatprep.subr.bf16.mxu1 %v3171_v59  ;;  %1994 = vmatprep.mubr.bf16.mxu0 %v320_v38  ;;  %v3223_v59 = vld [vmem:[%s4130_s1 + $0x2a0] sm:$0xff]   ;;  %v3255_v38 = vld [vmem:[%s4130_s1 + $0x3d8] sm:$0xff]  }
  0x27   :  { %2034 = vmatprep.mubr.bf16.mxu1 %v322_v41  ;;  %v3258_v41 = vld [vmem:[%s4130_s1 + $0x360] sm:$0xff]  }
  0x28   :  { %2854 = vmatpush3.bf16.msra.mxu0 %v3172_v60  ;;  %v3224_v60 = vld [vmem:[%s4130_s1 + $0x268] sm:$0xff]  }
  0x29   :  { %2876 = vmatpush3.bf16.msra.mxu1 %v3173_v61  ;;  %2855 = vmatprep.subr.bf16.mxu0 %v3174_v62  ;;  %v3225_v61 = vld [vmem:[%s4130_s1 + $0x2e8] sm:$0xff]  }
  0x2a   :  { %2877 = vmatprep.subr.bf16.mxu1 %v3175_v63  ;;  %v3226_v62 = vld [vmem:[%s4130_s1 + $0x228] sm:$0xff]  }
  0x2b   :  { %v3227_v63 = vld [vmem:[%s4130_s1 + $0x2a8] sm:$0xff]  }
  0x2c   :  { %2856 = vmatpush3.bf16.msra.mxu0 %v3176_v0  ;;  %v3228_v0 = vld [vmem:[%s4130_s1 + $0x270] sm:$0xff]  }
  0x2d   :  { %2878 = vmatpush3.bf16.msra.mxu1 %v3177_v1  ;;  %2857 = vmatprep.subr.bf16.mxu0 %v3178_v2  ;;  %v3229_v1 = vld [vmem:[%s4130_s1 + $0x2f0] sm:$0xff]  }
  0x2e   :  { %2879 = vmatprep.subr.bf16.mxu1 %v3179_v3  ;;  %v3230_v2 = vld [vmem:[%s4130_s1 + $0x230] sm:$0xff]  }
  0x2f   :  { %v3231_v3 = vld [vmem:[%s4130_s1 + $0x2b0] sm:$0xff]  }
  0x30   :  { %2858 = vmatpush3.bf16.msra.mxu0 %v3180_v4  ;;  %v3232_v4 = vld [vmem:[%s4130_s1 + $0x278] sm:$0xff]  }
  0x31   :  { %2880 = vmatpush3.bf16.msra.mxu1 %v3181_v5  ;;  %2859 = vmatprep.subr.bf16.mxu0 %v3182_v6  ;;  %v3233_v5 = vld [vmem:[%s4130_s1 + $0x2f8] sm:$0xff]  }
  0x32   :  { %2881 = vmatprep.subr.bf16.mxu1 %v3183_v7  ;;  %v3234_v6 = vld [vmem:[%s4130_s1 + $0x238] sm:$0xff]  }
  0x33   :  { %v3235_v7 = vld [vmem:[%s4130_s1 + $0x2b8] sm:$0xff]  }
  0x34   :  { %2860 = vmatpush3.bf16.msra.mxu0 %v3184_v8  ;;  %v3236_v8 = vld [vmem:[%s4129_s0 + $0x10] ss:$48 sps:$4 sm:$0xff]  }
  0x35   :  { %2882 = vmatpush3.bf16.msra.mxu1 %v3185_v9  ;;  %2861 = vmatprep.subr.bf16.mxu0 %v3186_v10  ;;  %v3238_v9 = vld [vmem:[%s4129_s0 + $0x70] ss:$48 sps:$4 sm:$0xff]   ;;  %v3240_v10 = vld [vmem:[%s4129_s0 + $0x14] ss:$48 sps:$4 sm:$0xff]  }
  0x36   :  { %2883 = vmatprep.subr.bf16.mxu1 %v3187_v11  ;;  %v3241_v11 = vld [vmem:[%s4129_s0 + $0x74] ss:$48 sps:$4 sm:$0xff]  }
  0x38   :  { %2862 = vmatpush3.bf16.msra.mxu0 %v3188_v12  ;;  %v157_v12 = vrot.slane %v3236_v8, %v3526_v43 }
  0x39   :  { %2884 = vmatpush3.bf16.msra.mxu1 %v3189_v13  ;;  %2863 = vmatprep.subr.bf16.mxu0 %v3190_v14  ;;  %v3242_v13 = vld [vmem:[%s4130_s1 + $0x340] sm:$0xff]   ;;  %v171_v14 = vrot.slane %v3238_v9, %v3526_v43 }
  0x3a   :  { %2885 = vmatprep.subr.bf16.mxu1 %v3191_v15  ;;  %v164_v15 = vrot.slane %v3240_v10, %v3526_v43  ;;  %v3283_v9 = vld [vmem:[%s4130_s1 + $0x480] sm:$0xff]  }
  0x3b   :  { %v179_v20 = vcombine.low %v157_v12, %v171_v14 }
  0x3c   :  { %2864 = vmatpush3.bf16.msra.mxu0 %v3192_v16  ;;  %v178_v16 = vrot.slane %v3241_v11, %v3526_v43 }
  0x3d   :  { %2886 = vmatpush3.bf16.msra.mxu1 %v3193_v17  ;;  %2865 = vmatprep.subr.bf16.mxu0 %v3194_v18  ;;  %v3243_v17 = vld [vmem:[%s4130_s1 + $0x3c0] sm:$0xff]   ;;  %v180_v18 = vcombine.high %v157_v12, %v171_v14  ;;  %v323_v26 = vpack.c.bf16 %v179_v20, %v179_v20  ;;  %v3284_v12 = vld [vmem:[%s4130_s1 + $0x448] sm:$0xff]   ;;  %v3290_v20 = vld [vmem:[%s4130_s1 + $0x410] sm:$0xff]  }
  0x3e   :  { %2887 = vmatprep.subr.bf16.mxu1 %v3195_v19  ;;  %v182_v19 = vcombine.high %v164_v15, %v178_v16  ;;  %v181_v22 = vcombine.low %v164_v15, %v178_v16  ;;  %v3285_v15 = vld [vmem:[%s4130_s1 + $0x4c8] sm:$0xff]  }
  0x3f   :  { %v324_v24 = vpack.c.bf16 %v180_v18, %v180_v18  ;;  %v3286_v16 = vld [vmem:[%s4130_s1 + $0x408] sm:$0xff]   ;;  %v3288_v18 = vld [vmem:[%s4130_s1 + $0x450] sm:$0xff]  }
  0x40   :  { %2866 = vmatpush3.bf16.msra.mxu0 %v3196_v23  ;;  %v3245_v23 = vld [vmem:[%s4130_s1 + $0x380] sm:$0xff]   ;;  %v325_v28 = vpack.c.bf16 %v181_v22, %v181_v22  ;;  %v3292_v22 = vld [vmem:[%s4130_s1 + $0x458] sm:$0xff]  }
  0x41   :  { %2888 = vmatpush3.bf16.msra.mxu1 %v3197_v25  ;;  %2895 = vmatprep.subr.bf16.mxu0 %v3204_v30  ;;  %v326_v25 = vpack.c.bf16 %v182_v19, %v182_v19  ;;  %v3248_v30 = vld [vmem:[%s4130_s1 + $0x308] sm:$0xff]   ;;  %v3289_v19 = vld [vmem:[%s4130_s1 + $0x4d0] sm:$0xff]  }
  0x42   :  { %2917 = vmatprep.subr.bf16.mxu1 %v3205_v33  ;;  %v3251_v33 = vld [vmem:[%s4130_s1 + $0x3d0] sm:$0xff]  }
  0x43   :  { %1995 = vmatmul.mubr.bf16.vlgmr.msra.gmra.mrb[4].mxu0 %v319_v39  ;;  %v3256_v39 = vld [vmem:[%s4130_s1 + $0x318] sm:$0xff]  }
  0x44   :  { %2035 = vmatmul.mubr.bf16.vlgmr.msra.gmra.mrb[4].mxu1 %v321_v42  ;;  %2896 = vmatpush3.bf16.msra.mxu0 %v3206_v36  ;;  %v3254_v36 = vld [vmem:[%s4130_s1 + $0x358] sm:$0xff]   ;;  %v3259_v42 = vld [vmem:[%s4130_s1 + $0x3e0] sm:$0xff]  }
  0x45   :  { %2918 = vmatpush3.bf16.msra.mxu1 %v3207_v40  ;;  %2897 = vmatprep.subr.bf16.mxu0 %v3208_v44  ;;  %v3257_v40 = vld [vmem:[%s4130_s1 + $0x398] sm:$0xff]   ;;  %v3260_v44 = vld [vmem:[%s4130_s1 + $0x320] sm:$0xff]  }
  0x46   :  { %2919 = vmatprep.subr.bf16.mxu1 %v3209_v45  ;;  %2074 = vmatprep.mubr.bf16.mxu0 %v324_v24  ;;  %v3261_v45 = vld [vmem:[%s4130_s1 + $0x3a0] sm:$0xff]   ;;  %v3294_v24 = vld [vmem:[%s4130_s1 + $0x418] sm:$0xff]  }
  0x47   :  { %2114 = vmatprep.mubr.bf16.mxu1 %v326_v25  ;;  %v3295_v25 = vld [vmem:[%s4130_s1 + $0x498] sm:$0xff]  }
  0x48   :  { %2898 = vmatpush3.bf16.msra.mxu0 %v3210_v46  ;;  %v3262_v46 = vld [vmem:[%s4130_s1 + $0x368] sm:$0xff]  }
  0x49   :  { %2920 = vmatpush3.bf16.msra.mxu1 %v3211_v47  ;;  %2899 = vmatprep.subr.bf16.mxu0 %v3212_v48  ;;  %v3263_v47 = vld [vmem:[%s4130_s1 + $0x3e8] sm:$0xff]  }
  0x4a   :  { %2921 = vmatprep.subr.bf16.mxu1 %v3213_v49  ;;  %v3264_v48 = vld [vmem:[%s4130_s1 + $0x328] sm:$0xff]  }
  0x4b   :  { %v3265_v49 = vld [vmem:[%s4130_s1 + $0x3a8] sm:$0xff]  }
  0x4c   :  { %2900 = vmatpush3.bf16.msra.mxu0 %v3214_v50  ;;  %v3266_v50 = vld [vmem:[%s4130_s1 + $0x370] sm:$0xff]  }
  0x4d   :  { %2922 = vmatpush3.bf16.msra.mxu1 %v3215_v51  ;;  %2901 = vmatprep.subr.bf16.mxu0 %v3216_v52  ;;  %v3267_v51 = vld [vmem:[%s4130_s1 + $0x3f0] sm:$0xff]  }
  0x4e   :  { %2923 = vmatprep.subr.bf16.mxu1 %v3217_v53  ;;  %v3268_v52 = vld [vmem:[%s4130_s1 + $0x330] sm:$0xff]  }
  0x4f   :  { %v3269_v53 = vld [vmem:[%s4130_s1 + $0x3b0] sm:$0xff]  }
  0x50   :  { %2902 = vmatpush3.bf16.msra.mxu0 %v3218_v54  ;;  %v3270_v54 = vld [vmem:[%s4130_s1 + $0x378] sm:$0xff]  }
  0x51   :  { %2924 = vmatpush3.bf16.msra.mxu1 %v3219_v55  ;;  %2903 = vmatprep.subr.bf16.mxu0 %v3220_v56  ;;  %v3271_v55 = vld [vmem:[%s4130_s1 + $0x3f8] sm:$0xff]  }
  0x52   :  { %2925 = vmatprep.subr.bf16.mxu1 %v3221_v57  ;;  %v3272_v56 = vld [vmem:[%s4130_s1 + $0x338] sm:$0xff]  }
  0x53   :  { %v3273_v57 = vld [vmem:[%s4130_s1 + $0x3b8] sm:$0xff]  }
  0x54   :  { %2904 = vmatpush3.bf16.msra.mxu0 %v3222_v58  ;;  %v3274_v58 = vld [vmem:[%s4129_s0 + $0x18] ss:$48 sps:$4 sm:$0xff]  }
  0x55   :  { %2926 = vmatpush3.bf16.msra.mxu1 %v3223_v59  ;;  %2905 = vmatprep.subr.bf16.mxu0 %v3224_v60  ;;  %v3276_v59 = vld [vmem:[%s4129_s0 + $0x78] ss:$48 sps:$4 sm:$0xff]   ;;  %v3278_v60 = vld [vmem:[%s4129_s0 + $0x1c] ss:$48 sps:$4 sm:$0xff]  }
  0x56   :  { %2927 = vmatprep.subr.bf16.mxu1 %v3225_v61  ;;  %v3279_v61 = vld [vmem:[%s4129_s0 + $0x7c] ss:$48 sps:$4 sm:$0xff]  }
  0x58   :  { %2906 = vmatpush3.bf16.msra.mxu0 %v3226_v62  ;;  %v193_v62 = vrot.slane %v3274_v58, %v3526_v43 }
  0x59   :  { %2928 = vmatpush3.bf16.msra.mxu1 %v3227_v63  ;;  %2907 = vmatprep.subr.bf16.mxu0 %v3228_v0  ;;  %v207_v63 = vrot.slane %v3276_v59, %v3526_v43  ;;  %v3280_v0 = vld [vmem:[%s4130_s1 + $0x440] sm:$0xff]  }
  0x5a   :  { %2929 = vmatprep.subr.bf16.mxu1 %v3229_v1  ;;  %v200_v1 = vrot.slane %v3278_v60, %v3526_v43  ;;  %v3321_v59 = vld [vmem:[%s4130_s1 + $0x580] sm:$0xff]  }
  0x5c   :  { %2908 = vmatpush3.bf16.msra.mxu0 %v3230_v2  ;;  %v214_v2 = vrot.slane %v3279_v61, %v3526_v43 }
  0x5d   :  { %2930 = vmatpush3.bf16.msra.mxu1 %v3231_v3  ;;  %2909 = vmatprep.subr.bf16.mxu0 %v3232_v4  ;;  %v3281_v3 = vld [vmem:[%s4130_s1 + $0x4c0] sm:$0xff]   ;;  %v216_v4 = vcombine.high %v193_v62, %v207_v63 }
  0x5e   :  { %2931 = vmatprep.subr.bf16.mxu1 %v3233_v5  ;;  %v215_v5 = vcombine.low %v193_v62, %v207_v63  ;;  %v217_v8 = vcombine.low %v200_v1, %v214_v2  ;;  %v3322_v62 = vld [vmem:[%s4130_s1 + $0x548] sm:$0xff]  }
  0x5f   :  { %v328_v10 = vpack.c.bf16 %v216_v4, %v216_v4  ;;  %v3326_v4 = vld [vmem:[%s4130_s1 + $0x550] sm:$0xff]  }
  0x60   :  { %2910 = vmatpush3.bf16.msra.mxu0 %v3234_v6  ;;  %v3282_v6 = vld [vmem:[%s4130_s1 + $0x400] sm:$0xff]   ;;  %v327_v11 = vpack.c.bf16 %v215_v5, %v215_v5  ;;  %v329_v14 = vpack.c.bf16 %v217_v8, %v217_v8  ;;  %v3327_v5 = vld [vmem:[%s4130_s1 + $0x5d0] sm:$0xff]   ;;  %v3330_v8 = vld [vmem:[%s4130_s1 + $0x558] sm:$0xff]  }
  0x61   :  { %2932 = vmatpush3.bf16.msra.mxu1 %v3235_v7  ;;  %2939 = vmatprep.subr.bf16.mxu0 %v3242_v13  ;;  %v218_v7 = vcombine.high %v200_v1, %v214_v2  ;;  %v3323_v1 = vld [vmem:[%s4130_s1 + $0x5c8] sm:$0xff]  }
  0x62   :  { %2961 = vmatprep.subr.bf16.mxu1 %v3243_v17  ;;  %v3287_v17 = vld [vmem:[%s4130_s1 + $0x488] sm:$0xff]  }
  0x63   :  { %2075 = vmatmul.mubr.bf16.vlgmr.msra.gmra.mrb[8].mxu0 %v323_v26  ;;  %v330_v13 = vpack.c.bf16 %v218_v7, %v218_v7  ;;  %v3296_v26 = vld [vmem:[%s4130_s1 + $0x460] sm:$0xff]   ;;  %v3324_v2 = vld [vmem:[%s4130_s1 + $0x508] sm:$0xff]   ;;  %v3329_v7 = vld [vmem:[%s4130_s1 + $0x590] sm:$0xff]  }
  0x64   :  { %2115 = vmatmul.mubr.bf16.vlgmr.msra.gmra.mrb[8].mxu1 %v325_v28  ;;  %2940 = vmatpush3.bf16.msra.mxu0 %v3244_v21  ;;  %v3291_v21 = vld [vmem:[%s4130_s1 + $0x490] sm:$0xff]   ;;  %v3298_v28 = vld [vmem:[%s4130_s1 + $0x420] sm:$0xff]  }
  0x65   :  { %2962 = vmatpush3.bf16.msra.mxu1 %v3245_v23  ;;  %2941 = vmatprep.subr.bf16.mxu0 %v3246_v27  ;;  %v3293_v23 = vld [vmem:[%s4130_s1 + $0x4d8] sm:$0xff]   ;;  %v3297_v27 = vld [vmem:[%s4130_s1 + $0x4e0] sm:$0xff]  }
  0x66   :  { %2963 = vmatprep.subr.bf16.mxu1 %v3247_v29  ;;  %2154 = vmatprep.mubr.bf16.mxu0 %v328_v10  ;;  %v3299_v29 = vld [vmem:[%s4130_s1 + $0x4a0] sm:$0xff]   ;;  %v3332_v10 = vld [vmem:[%s4130_s1 + $0x518] sm:$0xff]  }
  0x67   :  { %2194 = vmatprep.mubr.bf16.mxu1 %v330_v13  ;;  %v3335_v13 = vld [vmem:[%s4130_s1 + $0x5e0] sm:$0xff]  }
  0x68   :  { %2942 = vmatpush3.bf16.msra.mxu0 %v3248_v30  ;;  %v3300_v30 = vld [vmem:[%s4130_s1 + $0x468] sm:$0xff]  }
  0x69   :  { %2964 = vmatpush3.bf16.msra.mxu1 %v3249_v31  ;;  %2943 = vmatprep.subr.bf16.mxu0 %v3250_v32  ;;  %v3301_v31 = vld [vmem:[%s4130_s1 + $0x4e8] sm:$0xff]  }
  0x6a   :  { %2965 = vmatprep.subr.bf16.mxu1 %v3251_v33  ;;  %v3302_v32 = vld [vmem:[%s4130_s1 + $0x428] sm:$0xff]  }
  0x6b   :  { %v3303_v33 = vld [vmem:[%s4130_s1 + $0x4a8] sm:$0xff]  }
  0x6c   :  { %2944 = vmatpush3.bf16.msra.mxu0 %v3252_v34  ;;  %v3304_v34 = vld [vmem:[%s4130_s1 + $0x470] sm:$0xff]  }
  0x6d   :  { %2966 = vmatpush3.bf16.msra.mxu1 %v3253_v35  ;;  %2945 = vmatprep.subr.bf16.mxu0 %v3254_v36  ;;  %v3305_v35 = vld [vmem:[%s4130_s1 + $0x4f0] sm:$0xff]  }
  0x6e   :  { %2967 = vmatprep.subr.bf16.mxu1 %v3255_v38  ;;  %v3306_v36 = vld [vmem:[%s4130_s1 + $0x430] sm:$0xff]  }
  0x6f   :  { %v3307_v38 = vld [vmem:[%s4130_s1 + $0x4b0] sm:$0xff]  }
  0x70   :  { %2946 = vmatpush3.bf16.msra.mxu0 %v3256_v39  ;;  %v3308_v39 = vld [vmem:[%s4130_s1 + $0x478] sm:$0xff]  }
  0x71   :  { %2968 = vmatpush3.bf16.msra.mxu1 %v3257_v40  ;;  %2947 = vmatprep.subr.bf16.mxu0 %v3258_v41  ;;  %v3309_v40 = vld [vmem:[%s4130_s1 + $0x4f8] sm:$0xff]  }
  0x72   :  { %2969 = vmatprep.subr.bf16.mxu1 %v3259_v42  ;;  %v3310_v41 = vld [vmem:[%s4130_s1 + $0x438] sm:$0xff]  }
  0x73   :  { %v3311_v42 = vld [vmem:[%s4130_s1 + $0x4b8] sm:$0xff]  }
  0x74   :  { %2948 = vmatpush3.bf16.msra.mxu0 %v3260_v44  ;;  %v3312_v44 = vld [vmem:[%s4129_s0 + $0x20] ss:$48 sps:$4 sm:$0xff]  }
  0x75   :  { %2970 = vmatpush3.bf16.msra.mxu1 %v3261_v45  ;;  %2949 = vmatprep.subr.bf16.mxu0 %v3262_v46  ;;  %v3314_v45 = vld [vmem:[%s4129_s0 + $0x80] ss:$48 sps:$4 sm:$0xff]   ;;  %v3316_v46 = vld [vmem:[%s4129_s0 + $0x24] ss:$48 sps:$4 sm:$0xff]  }
  0x76   :  { %2971 = vmatprep.subr.bf16.mxu1 %v3263_v47  ;;  %v3317_v47 = vld [vmem:[%s4129_s0 + $0x84] ss:$48 sps:$4 sm:$0xff]  }
  0x78   :  { %2950 = vmatpush3.bf16.msra.mxu0 %v3264_v48  ;;  %v229_v48 = vrot.slane %v3312_v44, %v3526_v43 }
  0x79   :  { %2972 = vmatpush3.bf16.msra.mxu1 %v3265_v49  ;;  %2951 = vmatprep.subr.bf16.mxu0 %v3266_v50  ;;  %v243_v49 = vrot.slane %v3314_v45, %v3526_v43  ;;  %v236_v50 = vrot.slane %v3316_v46, %v3526_v43 }
  0x7a   :  { %2973 = vmatprep.subr.bf16.mxu1 %v3267_v51  ;;  %v3318_v51 = vld [vmem:[%s4130_s1 + $0x540] sm:$0xff]  }
  0x7c   :  { %2952 = vmatpush3.bf16.msra.mxu0 %v3268_v52  ;;  %v250_v52 = vrot.slane %v3317_v47, %v3526_v43 }
  0x7d   :  { %2974 = vmatpush3.bf16.msra.mxu1 %v3269_v53  ;;  %2953 = vmatprep.subr.bf16.mxu0 %v3270_v54  ;;  %v3319_v53 = vld [vmem:[%s4130_s1 + $0x5c0] sm:$0xff]   ;;  %v252_v54 = vcombine.high %v229_v48, %v243_v49 }
  0x7e   :  { %2975 = vmatprep.subr.bf16.mxu1 %v3271_v55  ;;  %v251_v55 = vcombine.low %v229_v48, %v243_v49  ;;  %v253_v58 = vcombine.low %v236_v50, %v250_v52 }
  0x7f   :  { %v332_v60 = vpack.c.bf16 %v252_v54, %v252_v54 }
  0x80   :  { %2954 = vmatpush3.bf16.msra.mxu0 %v3272_v56  ;;  %v3320_v56 = vld [vmem:[%s4130_s1 + $0x500] sm:$0xff]   ;;  %v331_v61 = vpack.c.bf16 %v251_v55, %v251_v55 }
  0x81   :  { %2976 = vmatpush3.bf16.msra.mxu1 %v3273_v57  ;;  %2983 = vmatprep.subr.bf16.mxu0 %v3280_v0  ;;  %v254_v57 = vcombine.high %v236_v50, %v250_v52  ;;  %v333_v0 = vpack.c.bf16 %v253_v58, %v253_v58 }
  0x82   :  { %3005 = vmatprep.subr.bf16.mxu1 %v3281_v3  ;;  %v3325_v3 = vld [vmem:[%s4130_s1 + $0x588] sm:$0xff]  }
  0x83   :  { %2155 = vmatmul.mubr.bf16.vlgmr.msra.gmra.mrb[12].mxu0 %v327_v11  ;;  %v334_v63 = vpack.c.bf16 %v254_v57, %v254_v57  ;;  %v3333_v11 = vld [vmem:[%s4130_s1 + $0x598] sm:$0xff]  }
  0x84   :  { %2195 = vmatmul.mubr.bf16.vlgmr.msra.gmra.mrb[12].mxu1 %v329_v14  ;;  %2984 = vmatpush3.bf16.msra.mxu0 %v3282_v6  ;;  %v3328_v6 = vld [vmem:[%s4130_s1 + $0x510] sm:$0xff]   ;;  %v3336_v14 = vld [vmem:[%s4130_s1 + $0x520] sm:$0xff]  }
  0x85   :  { %3006 = vmatpush3.bf16.msra.mxu1 %v3283_v9  ;;  %2985 = vmatprep.subr.bf16.mxu0 %v3284_v12  ;;  %v3331_v9 = vld [vmem:[%s4130_s1 + $0x5d8] sm:$0xff]   ;;  %v3334_v12 = vld [vmem:[%s4130_s1 + $0x560] sm:$0xff]  }
  0x86   :  { %3007 = vmatprep.subr.bf16.mxu1 %v3285_v15  ;;  %2234 = vmatprep.mubr.bf16.mxu0 %v332_v60  ;;  %v3337_v15 = vld [vmem:[%s4130_s1 + $0x5a0] sm:$0xff]  }
  0x87   :  { %2274 = vmatprep.mubr.bf16.mxu1 %v334_v63 }
  0x88   :  { %2986 = vmatpush3.bf16.msra.mxu0 %v3286_v16  ;;  %v3338_v16 = vld [vmem:[%s4130_s1 + $0x568] sm:$0xff]  }
  0x89   :  { %3008 = vmatpush3.bf16.msra.mxu1 %v3287_v17  ;;  %2987 = vmatprep.subr.bf16.mxu0 %v3288_v18  ;;  %v3339_v17 = vld [vmem:[%s4130_s1 + $0x5e8] sm:$0xff]  }
  0x8a   :  { %3009 = vmatprep.subr.bf16.mxu1 %v3289_v19  ;;  %v3340_v18 = vld [vmem:[%s4130_s1 + $0x528] sm:$0xff]  }
  0x8b   :  { %v3341_v19 = vld [vmem:[%s4130_s1 + $0x5a8] sm:$0xff]  }
  0x8c   :  { %2988 = vmatpush3.bf16.msra.mxu0 %v3290_v20  ;;  %v3342_v20 = vld [vmem:[%s4130_s1 + $0x570] sm:$0xff]  }
  0x8d   :  { %3010 = vmatpush3.bf16.msra.mxu1 %v3291_v21  ;;  %2989 = vmatprep.subr.bf16.mxu0 %v3292_v22  ;;  %v3343_v21 = vld [vmem:[%s4130_s1 + $0x5f0] sm:$0xff]  }
  0x8e   :  { %3011 = vmatprep.subr.bf16.mxu1 %v3293_v23  ;;  %v3344_v22 = vld [vmem:[%s4130_s1 + $0x530] sm:$0xff]  }
  0x8f   :  { %v3345_v23 = vld [vmem:[%s4130_s1 + $0x5b0] sm:$0xff]  }
  0x90   :  { %2990 = vmatpush3.bf16.msra.mxu0 %v3294_v24  ;;  %v3346_v24 = vld [vmem:[%s4130_s1 + $0x578] sm:$0xff]  }
  0x91   :  { %3012 = vmatpush3.bf16.msra.mxu1 %v3295_v25  ;;  %2991 = vmatprep.subr.bf16.mxu0 %v3296_v26  ;;  %v3347_v25 = vld [vmem:[%s4130_s1 + $0x5f8] sm:$0xff]  }
  0x92   :  { %3013 = vmatprep.subr.bf16.mxu1 %v3297_v27  ;;  %v3348_v26 = vld [vmem:[%s4130_s1 + $0x538] sm:$0xff]  }
  0x93   :  { %v3349_v27 = vld [vmem:[%s4130_s1 + $0x5b8] sm:$0xff]  }
  0x94   :  { %2992 = vmatpush3.bf16.msra.mxu0 %v3298_v28  ;;  %v3350_v28 = vld [vmem:[%s4129_s0 + $0x28] ss:$48 sps:$4 sm:$0xff]  }
  0x95   :  { %3014 = vmatpush3.bf16.msra.mxu1 %v3299_v29  ;;  %2993 = vmatprep.subr.bf16.mxu0 %v3300_v30  ;;  %v3352_v29 = vld [vmem:[%s4129_s0 + $0x88] ss:$48 sps:$4 sm:$0xff]   ;;  %v3354_v30 = vld [vmem:[%s4129_s0 + $0x2c] ss:$48 sps:$4 sm:$0xff]  }
  0x96   :  { %3015 = vmatprep.subr.bf16.mxu1 %v3301_v31  ;;  %v3355_v31 = vld [vmem:[%s4129_s0 + $0x8c] ss:$48 sps:$4 sm:$0xff]  }
  0x98   :  { %2994 = vmatpush3.bf16.msra.mxu0 %v3302_v32  ;;  %v265_v32 = vrot.slane %v3350_v28, %v3526_v43 }
  0x99   :  { %3016 = vmatpush3.bf16.msra.mxu1 %v3303_v33  ;;  %2995 = vmatprep.subr.bf16.mxu0 %v3304_v34  ;;  %v279_v33 = vrot.slane %v3352_v29, %v3526_v43  ;;  %v272_v34 = vrot.slane %v3354_v30, %v3526_v43 }
  0x9a   :  { %3017 = vmatprep.subr.bf16.mxu1 %v3305_v35  ;;  %v286_v35 = vrot.slane %v3355_v31, %v3526_v43  ;;  %v2606_v43 = vld [vmem:[%s4131_s2] ss:$0 sm:$0xff] }
  0x9c   :  { %2996 = vmatpush3.bf16.msra.mxu0 %v3306_v36  ;;  %v288_v36 = vcombine.high %v265_v32, %v279_v33 }
  0x9d   :  { %3018 = vmatpush3.bf16.msra.mxu1 %v3307_v38  ;;  %2997 = vmatprep.subr.bf16.mxu0 %v3308_v39  ;;  %v290_v38 = vcombine.high %v272_v34, %v286_v35  ;;  %v287_v39 = vcombine.low %v265_v32, %v279_v33 }
  0x9e   :  { %3019 = vmatprep.subr.bf16.mxu1 %v3309_v40  ;;  %v289_v40 = vcombine.low %v272_v34, %v286_v35 }
  0x9f   :  { %v335_v44 = vpack.c.bf16 %v287_v39, %v287_v39 }
  0xa0   :  { %2998 = vmatpush3.bf16.msra.mxu0 %v3310_v41  ;;  %v336_v41 = vpack.c.bf16 %v288_v36, %v288_v36  ;;  %v337_v45 = vpack.c.bf16 %v289_v40, %v289_v40 }
  0xa1   :  { %3020 = vmatpush3.bf16.msra.mxu1 %v3311_v42  ;;  %3027 = vmatprep.subr.bf16.mxu0 %v3318_v51  ;;  %v338_v42 = vpack.c.bf16 %v290_v38, %v290_v38 }
  0xa2   :  { %3049 = vmatprep.subr.bf16.mxu1 %v3319_v53 }
  0xa3   :  { %2235 = vmatmul.mubr.bf16.vlgmr.msra.gmra.mrb[16].mxu0 %v331_v61 }
  0xa4   :  { %2275 = vmatmul.mubr.bf16.vlgmr.msra.gmra.mrb[16].mxu1 %v333_v0  ;;  %3028 = vmatpush3.bf16.msra.mxu0 %v3320_v56 }
  0xa5   :  { %3050 = vmatpush3.bf16.msra.mxu1 %v3321_v59  ;;  %3029 = vmatprep.subr.bf16.mxu0 %v3322_v62 }
  0xa6   :  { %3051 = vmatprep.subr.bf16.mxu1 %v3323_v1  ;;  %2314 = vmatprep.mubr.bf16.mxu0 %v336_v41 }
  0xa7   :  { %2354 = vmatprep.mubr.bf16.mxu1 %v338_v42 }
  0xa8   :  { %3030 = vmatpush3.bf16.msra.mxu0 %v3324_v2 }
  0xa9   :  { %3052 = vmatpush3.bf16.msra.mxu1 %v3325_v3  ;;  %3031 = vmatprep.subr.bf16.mxu0 %v3326_v4 }
  0xaa   :  { %3053 = vmatprep.subr.bf16.mxu1 %v3327_v5 }
  0xac   :  { %3032 = vmatpush3.bf16.msra.mxu0 %v3328_v6  ;;  %v2364_v6 = vld [vmem:[%s4132_s3] sm:$0xff] }
  0xad   :  { %3054 = vmatpush3.bf16.msra.mxu1 %v3329_v7  ;;  %3033 = vmatprep.subr.bf16.mxu0 %v3330_v8  ;;  %v2365_v7 = vld [vmem:[%s4132_s3 + $0x8] sm:$0xff] }
  0xae   :  { %3055 = vmatprep.subr.bf16.mxu1 %v3331_v9  ;;  %v3112_v8 = vpack.c.bf16 %v2365_v7, %v2364_v6  ;;  %v3365_v9 = vmov 0.0|0.0  }
  0xb0   :  { %3034 = vmatpush3.bf16.msra.mxu0 %v3332_v10  ;;  %v2366_v10 = vld [vmem:[%s4132_s3 + $0x10] sm:$0xff] }
  0xb1   :  { %3056 = vmatpush3.bf16.msra.mxu1 %v3333_v11  ;;  %3035 = vmatprep.subr.bf16.mxu0 %v3334_v12  ;;  %v2367_v11 = vld [vmem:[%s4132_s3 + $0x18] sm:$0xff] }
  0xb2   :  { %3057 = vmatprep.subr.bf16.mxu1 %v3335_v13  ;;  %v3115_v12 = vpack.c.bf16 %v2367_v11, %v2366_v10  ;;  %v2368_v13 = vld [vmem:[%s4132_s3 + $0x20] sm:$0xff] }
  0xb4   :  { %3036 = vmatpush3.bf16.msra.mxu0 %v3336_v14  ;;  %v2369_v14 = vld [vmem:[%s4132_s3 + $0x28] sm:$0xff] }
  0xb5   :  { %3058 = vmatpush3.bf16.msra.mxu1 %v3337_v15  ;;  %3037 = vmatprep.subr.bf16.mxu0 %v3338_v16  ;;  %v3118_v15 = vpack.c.bf16 %v2369_v14, %v2368_v13  ;;  %v2370_v16 = vld [vmem:[%s4132_s3 + $0x30] sm:$0xff] }
  0xb6   :  { %3059 = vmatprep.subr.bf16.mxu1 %v3339_v17  ;;  %v2371_v17 = vld [vmem:[%s4132_s3 + $0x38] sm:$0xff] }
  0xb8   :  { %3038 = vmatpush3.bf16.msra.mxu0 %v3340_v18  ;;  %v3121_v18 = vpack.c.bf16 %v2371_v17, %v2370_v16  ;;  %v2801_v17 = vld [vmem:[%s4135_s6] ss:$0 sm:$0xff] }
  0xb9   :  { %3060 = vmatpush3.bf16.msra.mxu1 %v3341_v19  ;;  %3039 = vmatprep.subr.bf16.mxu0 %v3342_v20  ;;  %v3367_v19 = vmov 0.0   ;;  %v3356_v20 = vld [vmem:[%s4134_s5] sm:$0xff]  }
  0xba   :  { %3061 = vmatprep.subr.bf16.mxu1 %v3343_v21 }
  0xbc   :  { %3040 = vmatpush3.bf16.msra.mxu0 %v3344_v22 }
  0xbd   :  { %3062 = vmatpush3.bf16.msra.mxu1 %v3345_v23  ;;  %3041 = vmatprep.subr.bf16.mxu0 %v3346_v24 }
  0xbe   :  { %3063 = vmatprep.subr.bf16.mxu1 %v3347_v25 }
  0xc0   :  { %3042 = vmatpush3.bf16.msra.mxu0 %v3348_v26 }
  0xc1   :  { %3064 = vmatpush3.bf16.msra.mxu1 %v3349_v27  ;;  %3111 = vmatprep.subr.bf16.mxu0 %v3365_v9 }
  0xc2   :  { %3103 = vmatprep.subr.bf16.mxu1 %v3367_v19 }
  0xc3   :  { %2315 = vmatmul.mubr.bf16.vlgmr.msra.gmra.mrb[20].mxu0 %v335_v44 }
  0xc4   :  { %2355 = vmatmul.mubr.bf16.vlgmr.msra.gmra.mrb[20].mxu1 %v337_v45  ;;  %3113 = vmatpush3.bf16.msra.mxu0 %v3112_v8  ;;  %v3357_v8 = vld [vmem:[%s4134_s5 + $0x8] sm:$0xff]  }
  0xc5   :  { %3114 = vmatprep.subr.bf16.mxu0 %v3365_v9  ;;  %3099 = vmatprep.mubr.msk.bf16.mxu0 %vm3366_vm0, %v3367_v19 }
  0xc6   :  { %3107 = vmatprep.mubr.msk.bf16.mxu1 %vm3366_vm0, %v3367_v19  ;;  %3104 = vmatpush3.bf16.msra.mxu1 %v3356_v20 }
  0xc7   :  { %3105 = vmatprep.subr.bf16.mxu1 %v3367_v19 }
  0xc8   :  { %3116 = vmatpush3.bf16.msra.mxu0 %v3115_v12 }
  0xc9   :  { %3117 = vmatprep.subr.bf16.mxu0 %v3365_v9 }
  0xca   :  { %3106 = vmatpush3.bf16.msra.mxu1 %v3357_v8 }
  0xcc   :  { %3119 = vmatpush3.bf16.msra.mxu0 %v3118_v15 }
  0xcd   :  { %3120 = vmatprep.subr.bf16.mxu0 %v3365_v9  ;;  %v2799_v9 = vld [vmem:[%s4133_s4] ss:$0 sm:$0xff] }
  0xd0   :  { %3122 = vmatpush3.bf16.msra.mxu0 %v3121_v18 }
  0xf6   :  { %v2823_v46 = vpop.f32.mrb[0].mxu0 }
  0xf7   :  { %v2845_v47 = vpop.f32.mrb[0].mxu1  ;;  %v2824_v48 = vpop.f32.mrb[1].mxu0 }
  0xf8   :  { %v2846_v49 = vpop.f32.mrb[1].mxu1  ;;  %v2825_v50 = vadd.f32 %v2824_v48, %v2823_v46  ;;  %v2826_v52 = vpop.f32.mrb[2].mxu0 }
  0xf9   :  { %v2847_v51 = vadd.f32 %v2846_v49, %v2845_v47  ;;  %v2848_v53 = vpop.f32.mrb[2].mxu1  ;;  %v2827_v54 = vpop.f32.mrb[3].mxu0 }
  0xfa   :  { %v2849_v55 = vpop.f32.mrb[3].mxu1  ;;  %v1917_v56 = vadd.f32 %v2825_v50, %v2606_v43 }
  0xfc   :  { %v1957_v57 = vadd.f32 %v2847_v51, %v1917_v56 }
 0x116   :  { %v2867_v58 = vpop.f32.mrb[4].mxu0 }
 0x117   :  { %v2889_v59 = vpop.f32.mrb[4].mxu1  ;;  %v2868_v60 = vpop.f32.mrb[5].mxu0 }
 0x118   :  { %v2890_v61 = vpop.f32.mrb[5].mxu1  ;;  %v2869_v62 = vadd.f32 %v2868_v60, %v2867_v58  ;;  %v2870_v0 = vpop.f32.mrb[6].mxu0 }
 0x119   :  { %v2891_v63 = vadd.f32 %v2890_v61, %v2889_v59  ;;  %v2892_v1 = vpop.f32.mrb[6].mxu1  ;;  %v2871_v2 = vpop.f32.mrb[7].mxu0 }
 0x11a   :  { %v2893_v3 = vpop.f32.mrb[7].mxu1  ;;  %v1997_v4 = vadd.f32 %v2869_v62, %v1957_v57 }
 0x11c   :  { %v2037_v5 = vadd.f32 %v2891_v63, %v1997_v4 }
 0x136   :  { %v2911_v21 = vpop.f32.mrb[8].mxu0 }
 0x137   :  { %v2933_v22 = vpop.f32.mrb[8].mxu1  ;;  %v2912_v23 = vpop.f32.mrb[9].mxu0 }
 0x138   :  { %v2934_v24 = vpop.f32.mrb[9].mxu1  ;;  %v2913_v25 = vadd.f32 %v2912_v23, %v2911_v21  ;;  %v2914_v27 = vpop.f32.mrb[10].mxu0 }
 0x139   :  { %v2935_v26 = vadd.f32 %v2934_v24, %v2933_v22  ;;  %v2936_v28 = vpop.f32.mrb[10].mxu1  ;;  %v2915_v29 = vpop.f32.mrb[11].mxu0 }
 0x13a   :  { %v2937_v30 = vpop.f32.mrb[11].mxu1  ;;  %v2077_v31 = vadd.f32 %v2913_v25, %v2037_v5  ;;  %v3368_v28 = vmov 1966171168  }
 0x13b   :  { %v2536_v29 = vunpack.c.l.s4 %v3368_v28 }
 0x13c   :  { %v2117_v32 = vadd.f32 %v2935_v26, %v2077_v31 }
 0x13d   :  { %v2537_v30 = vunpack.c.0.s8 %v2536_v29 }
 0x156   :  { %v2955_v33 = vpop.f32.mrb[12].mxu0 }
 0x157   :  { %v2977_v34 = vpop.f32.mrb[12].mxu1  ;;  %v2956_v35 = vpop.f32.mrb[13].mxu0 }
 0x158   :  { %v2957_v36 = vadd.f32 %v2956_v35, %v2955_v33  ;;  %v2978_v38 = vpop.f32.mrb[13].mxu1  ;;  %v2958_v39 = vpop.f32.mrb[14].mxu0 }
 0x159   :  { %v2979_v40 = vadd.f32 %v2978_v38, %v2977_v34  ;;  %v2980_v41 = vpop.f32.mrb[14].mxu1  ;;  %v2959_v42 = vpop.f32.mrb[15].mxu0 }
 0x15a   :  { %v2157_v44 = vadd.f32 %v2957_v36, %v2117_v32  ;;  %v2981_v45 = vpop.f32.mrb[15].mxu1  ;;  %v2540_v32 = vsub.s32 %v2537_v30, %v3511_v37 }
 0x15c   :  { %v2197_v46 = vadd.f32 %v2979_v40, %v2157_v44 }
 0x176   :  { %v2999_v47 = vpop.f32.mrb[16].mxu0 }
 0x177   :  { %v3021_v43 = vpop.f32.mrb[16].mxu1  ;;  %v3000_v48 = vpop.f32.mrb[17].mxu0 }
 0x178   :  { %v3001_v49 = vadd.f32 %v3000_v48, %v2999_v47  ;;  %v3022_v50 = vpop.f32.mrb[17].mxu1  ;;  %v3002_v51 = vpop.f32.mrb[18].mxu0 }
 0x179   :  { %v3023_v52 = vadd.f32 %v3022_v50, %v3021_v43  ;;  %v3024_v53 = vpop.f32.mrb[18].mxu1  ;;  %v3003_v54 = vpop.f32.mrb[19].mxu0 }
 0x17a   :  { %v2237_v55 = vadd.f32 %v3001_v49, %v2197_v46  ;;  %v3025_v56 = vpop.f32.mrb[19].mxu1 }
 0x17c   :  { %v2277_v57 = vadd.f32 %v3023_v52, %v2237_v55 }
 0x196   :  { %v3043_v58 = vpop.f32.mrb[20].mxu0 }
 0x197   :  { %v3065_v59 = vpop.f32.mrb[20].mxu1  ;;  %v3044_v60 = vpop.f32.mrb[21].mxu0 }
 0x198   :  { %v3066_v61 = vpop.f32.mrb[21].mxu1  ;;  %v3045_v62 = vadd.f32 %v3044_v60, %v3043_v58  ;;  %v3046_v0 = vpop.f32.mrb[22].mxu0 }
 0x199   :  { %v3067_v63 = vadd.f32 %v3066_v61, %v3065_v59  ;;  %v3068_v1 = vpop.f32.mrb[22].mxu1  ;;  %v3047_v2 = vpop.f32.mrb[23].mxu0 }
 0x19a   :  { %v3069_v3 = vpop.f32.mrb[23].mxu1  ;;  %v2317_v4 = vadd.f32 %v3045_v62, %v2277_v57 }
 0x19c   :  { %v2357_v5 = vadd.f32 %v3067_v63, %v2317_v4 }
 0x19e   :  { %3358 = vtanh.f32 %v2357_v5 }
 0x1a8   :  { %v3359_v6 = vpop.eup %3358 }
 0x1a9   :  { %v2363_v7 = vpack.c.bf16 %v3359_v6, %v3359_v6 }
 0x1ab   :  { %3100 = vmatmul.mubr.msk.bf16.vlgmr.msra.gmra.mrb[24].mxu0 %vm2379_vm1, %v2363_v7 }
 0x27e   :  { %v2449_v10 = vpop.f32.mrb[24].mxu0 }
 0x27f   :  { %v2450_v11 = vadd.f32 %v2799_v9, %v2449_v10  ;;  %v3101_v12 = vpop.f32.mrb[25].mxu0 }
 0x280   :  { %v2452_v13 = vpop.f32.mrb[26].mxu0 }
 0x281   :  { %v2455_v14 = vmax.f32 %v2450_v11, 0.0  ;;  %v3102_v15 = vpop.f32.mrb[27].mxu0 }
 0x283   :  { %v2456_v16 = vpack.c.bf16 %v2455_v14, %v2455_v14 }
 0x285   :  { %3108 = vmatmul.mubr.msk.bf16.vlgmr.msra.gmra.mrb[24].mxu1 %vm2480_vm2, %v2456_v16 }
 0x358   :  { %v2518_v18 = vpop.f32.mrb[24].mxu1 }
 0x359   :  { %v2519_v19 = vadd.f32 %v2801_v17, %v2518_v18  ;;  %v3109_v20 = vpop.f32.mrb[25].mxu1 }
 0x35a   :  { %v2521_v21 = vpop.f32.mrb[26].mxu1 }
 0x35b   :  { %2524 = vmax.xlane.f32.xlu0 %v2519_v19  ;;  %v3110_v22 = vpop.f32.mrb[27].mxu1 }
 0x3e8   :  { %v2525_v23 = vpop.xlane.xlu0 %2524 }
 0x3e9   :  { %v2526_v24 = vsub.f32 %v2519_v19, %v2525_v23 }
 0x3eb   :  { %v2527_v25 = vmul.f32 1.442695, %v2526_v24 }
 0x3ed   :  { %3360 = vpow2.f32 %v2527_v25 }
 0x3f7   :  { %v3361_v26 = vpop.eup %3360 }
 0x3f8   :  { %2529 = vadd.xlane.f32.xlu0 %v3361_v26 }
 0x485   :  { %v2530_v27 = vpop.xlane.xlu0 %2529 }
 0x486   :  { %3362 = vrcp.f32 %v2530_v27 }
 0x490   :  { %v3363_v31 = vpop.eup %3362 }
 0x491   :  { %v2532_v33 = vmul.f32 %v3363_v31, %v3361_v26 }
 0x493   :  { %v2533_v34 = vpack.c.bf16 %v2532_v33, %v2532_v33 }
 0x495   :  { %v2541_v35 = vrot.slane %v2533_v34, %v2540_v32 }
 0x497   :  { %2805 = vst.sshfl [vmem:[#allocation2] sm:$0x1 pattern:$0x73625140] %v2541_v35 }
 0x49e   :  { %v2584_v36 = vld [vmem:[#allocation2] sm:$0x1] }
 0x49f   :  { %2585 = vst [vmem:[%s4136_s7] sm:$0x1] %v2584_v36 }

</bundles_post_ra>
